<compile_context>
chip_gen: v5e
topology: v5e:2x2
jax: 0.10.0
libtpu: 0.0.40
codegen_flags: <defaults>
</compile_context>

<pallas_src>
import math
import functools
import numpy as np
import jax
import jax.numpy as jnp
from jax.experimental import pallas as pl
from jax.experimental.pallas import tpu as pltpu


def _round_up(v, m):
    return (v + m - 1) // m * m


def _pick_vmem_limit():
    """Per-generation VMEM cap: ~75% of physical, never above 100 MiB.
    (v5e/v6e: 128 MiB physical -> 96 MiB; v7x: 64 MiB/TC -> 48 MiB.)"""
    try:
        cap = int(pltpu.get_tpu_info().vmem_capacity_bytes)
    except Exception:
        cap = 64 * 1024 * 1024          # conservative fallback, safe on v7x
    return min((cap * 3) // 4, 100 * 1024 * 1024)


# --------------------------------------------------------------- prep kernel
def _gat_prep_kernel(x_ref, w_ref, wa_ref, h_ref, l_ref):
    x = x_ref[...]                                                   # [TM, F] bf16
    # h = x @ W  (bf16 operands, f32 accumulation on the MXU)
    h_ref[...] = jnp.dot(x, w_ref[...],
                         preferred_element_type=jnp.float32).astype(jnp.bfloat16)
    # Fused logit matmul with the precomputed Wa = W @ A: [TM, F] x [F, 2H]
    #   columns [:H]  = a_dst . h_i   (target-side logits)
    #   columns [H:]  = a_src . h_j   (source-side logits)
    l_ref[...] = jnp.dot(x, wa_ref[...], preferred_element_type=jnp.float32)


# --------------------------------------------------------------- main kernel
def _gat_main_kernel(dst_ref, srct_ref, mask_ref, h_ref, b_ref, o_ref,
                     m_ref, l_ref, acc_ref, *, heads, c_out, negative_slope):
    j = pl.program_id(1)

    @pl.when(j == 0)
    def _():
        m_ref[...] = jnp.full(m_ref.shape, -1e30, jnp.float32)
        l_ref[...] = jnp.zeros(l_ref.shape, jnp.float32)
        acc_ref[...] = jnp.zeros(acc_ref.shape, jnp.float32)

    # int8 {0 off-edge, 1 on-edge} tile -> f32 additive mask {-1e30, 0},
    # sentinel applied in f32 INSIDE the kernel (int8 can't hold -1e30).
    mask_add = (mask_ref[...].astype(jnp.float32) - 1.0) * jnp.float32(1e30)

    slope = jnp.float32(negative_slope)
    # TODO(synk): for heads >= 8 switch this Python unroll to
    # lax.fori_loop(..., unroll=True) to bound live [TM, TN] temporaries.
    for hd in range(heads):
        col = slice(hd * c_out, (hd + 1) * c_out)
        e = dst_ref[:, hd:hd + 1] + srct_ref[hd:hd + 1, :]           # [TM, TN]
        e = jnp.maximum(e, slope * e)                                # LeakyReLU (2 VPU ops)
        e = e + mask_add                                             # mask non-edges
        m_old = m_ref[:, hd:hd + 1]                                  # [TM, 1]
        m_new = jnp.maximum(m_old, jnp.max(e, axis=1, keepdims=True))
        corr = jnp.exp(m_old - m_new)                                # rescale factor
        # TODO(synk): on v6e/v7x, exp in bf16 (p = jnp.exp((e - m_new).astype(bf16)))
        # roughly doubles EUP throughput; kept in f32 here for v5e portability.
        p = jnp.exp(e - m_new)                                       # [TM, TN], 0 off-edge
        l_ref[:, hd:hd + 1] = corr * l_ref[:, hd:hd + 1] + \
            jnp.sum(p, axis=1, keepdims=True)
        # un-normalized aggregation on the MXU; 1/denom deferred to finalize
        agg = jnp.dot(p.astype(jnp.bfloat16), h_ref[:, col],
                      preferred_element_type=jnp.float32)            # [TM, C]
        acc_ref[:, col] = corr * acc_ref[:, col] + agg
        m_ref[:, hd:hd + 1] = m_new

    @pl.when(j == pl.num_programs(1) - 1)
    def _():
        # deferred normalization (EUP approximate reciprocal on [TM, H])
        inv_l = pl.reciprocal(l_ref[...] + jnp.float32(1e-16), approx=True)
        rows = [acc_ref[:, hd * c_out:(hd + 1) * c_out] * inv_l[:, hd:hd + 1]
                for hd in range(heads)]
        full_row = rows[0] if heads == 1 else jnp.concatenate(rows, axis=1)
        # single lane-dense store of all heads (+ bias)
        o_ref[...] = full_row + b_ref[...]


# ------------------------------------------------------------------ wrapper
def gat_conv_forward(x, edge_index, weight, att, bias, negative_slope=0.2,
                     block_rows=256, block_cols=512):
    """Pallas implementation of GATConv.forward (concat=True, dropout=0)."""
    n_nodes, f_in = x.shape
    heads = att.shape[1]
    c_out = att.shape[2] // 2
    hc = heads * c_out

    # ---- tile / padding choices ----
    # (On v5e/v7x, block_rows=128 may pipeline better; 256/512 fit everywhere.)
    if n_nodes <= block_rows:
        tm = max(_round_up(n_nodes, 8), 8)
        tn = tm                              # single column tile == full extent
        n_pad = tm
    else:
        tm = block_rows
        tn = block_cols
        n_pad = _round_up(n_nodes, (tm * tn) // math.gcd(tm, tn))
    grid_rows = n_pad // tm
    grid_cols = n_pad // tn
    vmem_limit = _pick_vmem_limit()

    # ---- glue (plain JAX): int8 adjacency + packed attention matrix ----
    # NOTE: dense adjacency assumes no duplicate (src, dst) edges in the input.
    src, dst = edge_index[0], edge_index[1]          # row0 = source j, row1 = target i
    mask = jnp.zeros((n_pad, n_pad), jnp.int8)       # built directly in int8
    edge_vals = jnp.where(src != dst, 1, 0).astype(jnp.int8)   # remove_self_loops
    mask = mask.at[dst, src].set(edge_vals)
    diag = jnp.arange(n_nodes)
    mask = mask.at[diag, diag].set(jnp.int8(1))                 # add_self_loops

    att_dst = att[0, :, :c_out].astype(jnp.float32)  # multiplies x_i (target)  [H, C]
    att_src = att[0, :, c_out:].astype(jnp.float32)  # multiplies x_j (source)  [H, C]
    eye_h = jnp.eye(heads, dtype=jnp.float32)
    a_dst = (att_dst[:, :, None] * eye_h[:, None, :]).reshape(hc, heads)
    a_src = (att_src[:, :, None] * eye_h[:, None, :]).reshape(hc, heads)
    a_packed = jnp.concatenate([a_dst, a_src], axis=1)          # [H*C, 2H]
    # Precompute Wa = W @ A so pass-1 logits contract over f_in, not hc.
    wa = (weight.astype(jnp.float32) @ a_packed).astype(jnp.bfloat16)   # [F, 2H]

    x_pad = jnp.zeros((n_pad, f_in), jnp.bfloat16).at[:n_nodes].set(
        x.astype(jnp.bfloat16))
    w_bf16 = weight.astype(jnp.bfloat16)
    bias2d = bias.reshape(1, hc).astype(jnp.float32)

    # ---- pass 1: h = x @ W and fused attention logits ----
    h_bf16, logits = pl.pallas_call(
        _gat_prep_kernel,
        out_shape=(jax.ShapeDtypeStruct((n_pad, hc), jnp.bfloat16),
                   jax.ShapeDtypeStruct((n_pad, 2 * heads), jnp.float32)),
        grid=(grid_rows,),
        in_specs=[pl.BlockSpec((tm, f_in), lambda i: (i, 0)),
                  pl.BlockSpec((f_in, hc), lambda i: (0, 0)),
                  pl.BlockSpec((f_in, 2 * heads), lambda i: (0, 0))],
        out_specs=(pl.BlockSpec((tm, hc), lambda i: (i, 0)),
                   pl.BlockSpec((tm, 2 * heads), lambda i: (i, 0))),
        compiler_params=pltpu.CompilerParams(
            dimension_semantics=("parallel",),
            vmem_limit_bytes=vmem_limit),
    )(x_pad, w_bf16, wa)

    # tiny O(N*H) layout glue between the two kernels
    dst_logits = logits[:, :heads]                    # [N_pad, H]
    src_logits_t = logits[:, heads:].T                # [H, N_pad]

    # ---- pass 2: online-softmax attention + aggregation, tiled (rows, cols) ----
    kernel = functools.partial(_gat_main_kernel, heads=heads, c_out=c_out,
                               negative_slope=negative_slope)
    out = pl.pallas_call(
        kernel,
        out_shape=jax.ShapeDtypeStruct((n_pad, hc), jnp.float32),
        grid=(grid_rows, grid_cols),
        in_specs=[pl.BlockSpec((tm, heads), lambda i, j: (i, 0)),    # dst logits (row tile)
                  pl.BlockSpec((heads, tn), lambda i, j: (0, j)),    # src logits^T (col tile)
                  pl.BlockSpec((tm, tn), lambda i, j: (i, j)),       # int8 mask tile
                  pl.BlockSpec((tn, hc), lambda i, j: (j, 0)),       # h column block
                  pl.BlockSpec((1, hc), lambda i, j: (0, 0))],       # bias
        out_specs=pl.BlockSpec((tm, hc), lambda i, j: (i, 0)),       # held across j
        scratch_shapes=[pltpu.VMEM((tm, heads), jnp.float32),        # running max m
                        pltpu.VMEM((tm, heads), jnp.float32),        # running denom l
                        pltpu.VMEM((tm, hc), jnp.float32)],          # running aggregate
        compiler_params=pltpu.CompilerParams(
            dimension_semantics=("parallel", "arbitrary"),
            vmem_limit_bytes=vmem_limit),
    )(dst_logits, src_logits_t, mask, h_bf16, bias2d)

    return out[:n_nodes]


# ---------------------------------------------------------------- reference
def gat_reference(x, edge_index, weight, att, bias, negative_slope=0.2):
    """Pure-JAX edge-list reference mirroring the PyTorch/PyG semantics."""
    n_nodes = x.shape[0]
    heads = att.shape[1]
    c_out = att.shape[2] // 2

    src = np.asarray(edge_index[0])
    dst = np.asarray(edge_index[1])
    keep = src != dst
    src, dst = src[keep], dst[keep]
    loop = np.arange(n_nodes)
    src = jnp.asarray(np.concatenate([src, loop]))
    dst = jnp.asarray(np.concatenate([dst, loop]))

    h = (x @ weight).reshape(n_nodes, heads, c_out)
    x_j = h[src]                                    # source features per edge
    x_i = h[dst]                                    # target features per edge
    alpha = jnp.sum(jnp.concatenate([x_i, x_j], axis=-1) * att[0], axis=-1)  # [E, H]
    alpha = jnp.where(alpha >= 0, alpha, negative_slope * alpha)
    amax = jax.ops.segment_max(alpha, dst, num_segments=n_nodes)
    alpha = jnp.exp(alpha - amax[dst])
    asum = jax.ops.segment_sum(alpha, dst, num_segments=n_nodes)
    alpha = alpha / (asum[dst] + 1e-16)
    msg = x_j * alpha[:, :, None]
    out = jax.ops.segment_sum(msg, dst, num_segments=n_nodes)
    return out.reshape(n_nodes, heads * c_out) + bias


if __name__ == "__main__":
    N, F_IN, HEADS, C_OUT = 16, 8, 2, 8

    key = jax.random.PRNGKey(0)
    kx, kw, ka = jax.random.split(key, 3)

    # node features
    x = jax.random.normal(kx, (N, F_IN), dtype=jnp.float32)

    # ring graph (both directions), no self loops; row0 = source, row1 = target
    idx = jnp.arange(N)
    src = jnp.concatenate([idx, (idx + 1) % N])
    dst = jnp.concatenate([(idx + 1) % N, idx])
    edge_index = jnp.stack([src, dst]).astype(jnp.int32)          # [2, 32]

    # parameters (deterministic glorot-uniform, zero bias — matches reset_parameters)
    stdv_w = math.sqrt(6.0 / (F_IN + HEADS * C_OUT))
    weight = jax.random.uniform(kw, (F_IN, HEADS * C_OUT), jnp.float32, -stdv_w, stdv_w)
    stdv_a = math.sqrt(6.0 / (HEADS + 2 * C_OUT))
    att = jax.random.uniform(ka, (1, HEADS, 2 * C_OUT), jnp.float32, -stdv_a, stdv_a)
    bias = jnp.zeros((HEADS * C_OUT,), jnp.float32)

    out = jax.block_until_ready(gat_conv_forward(x, edge_index, weight, att, bias))

    ref = gat_reference(x, edge_index, weight, att, bias)
    # tolerance loosened slightly for the bf16 MXU operands (f32 accumulation)
    np.testing.assert_allclose(np.asarray(out), np.asarray(ref), rtol=3e-2, atol=3e-2)

    print("KERNEL_OK")
</pallas_src>

<mosaic_0001>
module attributes {stable_mosaic.version = 11 : i64} {
  func.func @_gat_prep_kernel(%arg0: i32, %arg1: memref<16x8xbf16, #tpu.memory_space<vmem>>, %arg2: memref<8x16xbf16, #tpu.memory_space<vmem>>, %arg3: memref<8x4xbf16, #tpu.memory_space<vmem>>, %arg4: memref<16x16xbf16, #tpu.memory_space<vmem>>, %arg5: memref<16x4xf32, #tpu.memory_space<vmem>>) attributes {dimension_semantics = [#tpu.dimension_semantics<parallel>], iteration_bounds = array<i64: 1>, scalar_prefetch = 0 : i64, scratch_operands = 0 : i64, tpu.core_type = #tpu.core_type<tc>, window_params = [{transform_indices = @transform_0, window_bounds = array<i64: 16, 8>}, {pipeline_mode = #tpu.pipeline_mode<synchronous>, transform_indices = @transform_1, window_bounds = array<i64: 8, 16>}, {pipeline_mode = #tpu.pipeline_mode<synchronous>, transform_indices = @transform_2, window_bounds = array<i64: 8, 4>}, {transform_indices = @transform_3, window_bounds = array<i64: 16, 16>}, {transform_indices = @transform_4, window_bounds = array<i64: 16, 4>}]} {
    %c0 = arith.constant 0 : index
    %c0_0 = arith.constant 0 : index
    %0 = vector.load %arg1[%c0, %c0_0] : memref<16x8xbf16, #tpu.memory_space<vmem>>, vector<16x8xbf16>
    %c0_1 = arith.constant 0 : index
    %c0_2 = arith.constant 0 : index
    %1 = vector.load %arg2[%c0_1, %c0_2] : memref<8x16xbf16, #tpu.memory_space<vmem>>, vector<8x16xbf16>
    %cst = arith.constant dense<0.000000e+00> : vector<16x16xf32>
    %2 = tpu.matmul %0, %1, %cst {dimension_numbers = #tpu.dot_dimension_numbers<[1], [0], [0], [1], [0, 0, 1, 1], [], []>} : vector<16x8xbf16>, vector<8x16xbf16>, vector<16x16xf32> -> vector<16x16xf32>
    %3 = arith.truncf %2 : vector<16x16xf32> to vector<16x16xbf16>
    %c0_3 = arith.constant 0 : index
    %c0_4 = arith.constant 0 : index
    %4 = vector.load %arg4[%c0_3, %c0_4] : memref<16x16xbf16, #tpu.memory_space<vmem>>, vector<16x16xbf16>
    tpu.vector_store %arg4[%c0_3, %c0_4], %3 {strides = array<i32>} : memref<16x16xbf16, #tpu.memory_space<vmem>>, vector<16x16xbf16>,
    %c0_5 = arith.constant 0 : index
    %c0_6 = arith.constant 0 : index
    %5 = vector.load %arg3[%c0_5, %c0_6] : memref<8x4xbf16, #tpu.memory_space<vmem>>, vector<8x4xbf16>
    %cst_7 = arith.constant dense<0.000000e+00> : vector<16x4xf32>
    %6 = tpu.matmul %0, %5, %cst_7 {dimension_numbers = #tpu.dot_dimension_numbers<[1], [0], [0], [1], [0, 0, 1, 1], [], []>} : vector<16x8xbf16>, vector<8x4xbf16>, vector<16x4xf32> -> vector<16x4xf32>
    %c0_8 = arith.constant 0 : index
    %c0_9 = arith.constant 0 : index
    %7 = vector.load %arg5[%c0_8, %c0_9] : memref<16x4xf32, #tpu.memory_space<vmem>>, vector<16x4xf32>
    tpu.vector_store %arg5[%c0_8, %c0_9], %6 {strides = array<i32>} : memref<16x4xf32, #tpu.memory_space<vmem>>, vector<16x4xf32>,
    return
  }
  func.func @transform_0(%arg0: i32) -> (i32, i32) {
    %c0_i32 = arith.constant 0 : i32
    %c0_i32_0 = arith.constant 0 : i32
    return %arg0, %c0_i32 : i32, i32
  }
  func.func @transform_1(%arg0: i32) -> (i32, i32) {
    %c0_i32 = arith.constant 0 : i32
    %c0_i32_0 = arith.constant 0 : i32
    %c0_i32_1 = arith.constant 0 : i32
    return %c0_i32, %c0_i32_0 : i32, i32
  }
  func.func @transform_2(%arg0: i32) -> (i32, i32) {
    %c0_i32 = arith.constant 0 : i32
    %c0_i32_0 = arith.constant 0 : i32
    %c0_i32_1 = arith.constant 0 : i32
    return %c0_i32, %c0_i32_0 : i32, i32
  }
  func.func @transform_3(%arg0: i32) -> (i32, i32) {
    %c0_i32 = arith.constant 0 : i32
    %c0_i32_0 = arith.constant 0 : i32
    return %arg0, %c0_i32 : i32, i32
  }
  func.func @transform_4(%arg0: i32) -> (i32, i32) {
    %c0_i32 = arith.constant 0 : i32
    %c0_i32_0 = arith.constant 0 : i32
    return %arg0, %c0_i32 : i32, i32
  }
}

</mosaic_0001>

<bundles_post_ra>
// kernel: tpu_custom_call.1
= control target key start
LH: loop header
LB: loop body
LE: loop exit
PB: predicated region body
PF: predicated region fallthrough
CT: control target
= control target key end

     0   :  { %vm30_vm0 = vcmask 1043456   ;;  %s178_s0 = inlined_call_operand.vmem [shape: bf16[16,8], index: 0, kind: input, shape index: {}]   ;;  %s179_s1 = inlined_call_operand.vmem [shape: bf16[8,16], index: 1, kind: input, shape index: {}]   ;;  %s180_s2 = inlined_call_operand.vmem [shape: bf16[8,4], index: 2, kind: input, shape index: {}]   ;;  %s181_s3 = inlined_call_operand.hbm [shape: bf16[16,16], index: 3, kind: output, shape index: {0}]   ;;  %s182_s4 = inlined_call_operand.vmem [shape: f32[16,4], index: 4, kind: output, shape index: {1}]  }
   0x1   :  { %v20_v0 = vld [vmem:[%s179_s1] sm:$0xf] }
   0x2   :  { %v53_v1 = vld [vmem:[%s180_s2] sm:$0xf]  ;;  %v32_v2 = vsel %vm30_vm0, %v20_v0, 0 }
   0x3   :  { %v55_v3 = vsel %vm30_vm0, %v53_v1, 0  ;;  %v102_v4 = vld [vmem:[%s178_s0] sm:$0xff] }
   0x4   :  { %10 = vsyncpa [#allocation3], 0  ;;  %41 = vmatpush.bf16.msra.mxu0 %v32_v2  ;;  %64 = vmatpush.bf16.msra.mxu1 %v55_v3  ;;  %vm26_vm1 = vcmask 64512   ;;  %vm71_vm2 = vcmask 31744   ;;  %vm50_vm3 = vcmask 125952   ;;  %s132_s2 = smov [#allocation2]  }
   0x5   :  { %s78_s22 = sshll.u32 %s132_s2, 4  ;;  %s80_s24 = sshll.u32 %s181_s3, 4  ;;  %s79_s22 = int_to_ptr.vmem [resolvable:$true] %s78_s22  ;;  %s81_s24 = int_to_ptr.hbm [resolvable:$true] %s80_s24 }
   0x6   :  { %s133_s27 = smov 64   ;;  %s134_s28 = smov 4  }
   0x7   :  { %100 = vmatmul.msk.bf16.vlgmr.msra.gmra.mxu0 %vm26_vm1, %v102_v4  ;;  %101 = vmatmul.msk.bf16.vlgmr.msra.gmra.mxu1 %vm26_vm1, %v102_v4 }
  0x84   :  { %v43_v5 = vpop.f32.mrf.mxu0  ;;  %v66_v6 = vpop.f32.mrf.mxu1 }
  0x85   :  { %v48_v7 = vpack.c.bf16 %v43_v5, %v43_v5  ;;  %72 = vst.msk [vmem:[%s182_s4] sm:$0xff] %vm71_vm2, %v66_v6 }
  0x87   :  { %51 = vst.msk [vmem:[#allocation2] sm:$0xf] %vm50_vm3, %v48_v7 }
  0x8c   :  { %v45_v8 = vpop.f32.mrf.mxu0  ;;  %v68_v9 = vpop.f32.mrf.mxu1 }
  0x8d   :  { %v49_v10 = vpack.c.bf16 %v45_v8, %v45_v8  ;;  %73 = vst.msk [vmem:[%s182_s4 + $0x8] sm:$0xff] %vm71_vm2, %v68_v9 }
  0x8f   :  { %52 = vst.msk [vmem:[#allocation2 + $0x4] sm:$0xf] %vm50_vm3, %v49_v10 }
  0x90   :  { %86 = dma.vmem_to_hbm [thread:$0]  %s79_s22, 128, %s81_s24, [#allocation3], %s133_s27, %s133_s27, %s134_s28  }
  0x91   :  { %130 = dma.done.wait [#allocation3], 128  }
  0x92   :  { %131 = vsyncadd [#allocation3], 4294967168 }
  0x93   :  { %95 = vsyncpa [#allocation3], 1 }

</bundles_post_ra>
